<compile_context>
chip_gen: v7x
topology: tpu7x:2x2x1
jax: 0.10.0
libtpu: 0.0.40
codegen_flags: <defaults>
</compile_context>

<pallas_src>
import math

import jax
import jax.numpy as jnp
from jax.experimental import pallas as pl
from jax.experimental.pallas import tpu as pltpu

LN_EPS = 1e-12                    # BERT default layer_norm_eps
_INV_SQRT2 = 1.0 / math.sqrt(2.0)


def _round_up(x, m):
    return ((x + m - 1) // m) * m


# --------------------------------------------------------------------------
# Kernel
# --------------------------------------------------------------------------
def mlm_head_kernel(x_ref, w1_ref, b1_ref, gamma_ref, beta_ref,
                    wdec_ref, bdec_ref, out_ref, h_ref):
    # ---- transform + GELU + LayerNorm: once per token tile, cached in VMEM --
    @pl.when(pl.program_id(1) == 0)
    def _():
        h = jnp.dot(x_ref[...], w1_ref[...],
                    preferred_element_type=jnp.float32)         # (tm, H) f32
        h = h + b1_ref[...]                                      # (1, H) bcast
        # exact erf-GELU (nn.GELU() default), f32 elementwise
        h = 0.5 * h * (1.0 + jax.lax.erf(h * _INV_SQRT2))
        # LayerNorm over hidden dim (biased variance, eps=1e-12).
        # Note: zero-padded token rows give var=0 -> h == beta; finite and
        # sliced off by the wrapper.
        mean = jnp.mean(h, axis=-1, keepdims=True)
        c = h - mean
        var = jnp.mean(c * c, axis=-1, keepdims=True)
        h = c * jax.lax.rsqrt(var + LN_EPS)
        h = h * gamma_ref[...] + beta_ref[...]
        h_ref[...] = h.astype(h_ref.dtype)                       # cache (bf16)

    # ---- decoder vocab tile: (tm, H) @ (H, tn) + vocab-bias tile ------------
    logits = jnp.dot(h_ref[...], wdec_ref[...],
                     preferred_element_type=jnp.float32)
    out_ref[...] = (logits + bdec_ref[...]).astype(out_ref.dtype)


# --------------------------------------------------------------------------
# One-time parameter preparation (hoisted out of the per-call path)
# --------------------------------------------------------------------------
def prepare_mlm_params(w1, b1, gamma, beta, w_dec, b_vocab,
                       matmul_dtype=jnp.bfloat16, vocab_pad_multiple=512):
    """Transpose PyTorch (out, in) weights to (in, out), cast matmul operands
    to bf16, and pad the vocab dimension ONCE to a tile-friendly multiple so
    the forward path never re-copies the (H, V) decoder weight.
      w1:      (H, H)  nn.Linear(hidden, hidden).weight
      b1:      (H,)
      gamma:   (H,), beta: (H,)   LayerNorm affine
      w_dec:   (V, H)  nn.Linear(hidden, vocab, bias=False).weight
      b_vocab: (V,)    separate MLM bias parameter
    Returns a tuple; last element is the true (unpadded) vocab size.
    """
    H = w1.shape[0]
    V = w_dec.shape[0]
    pad_mult = _round_up(max(128, vocab_pad_multiple), 128)
    Vp = _round_up(V, pad_mult)

    wdec_t = jnp.asarray(w_dec).T.astype(matmul_dtype)           # (H, V)
    bvoc = jnp.asarray(b_vocab).reshape(1, V).astype(jnp.float32)
    if Vp != V:
        wdec_t = jnp.pad(wdec_t, ((0, 0), (0, Vp - V)))
        bvoc = jnp.pad(bvoc, ((0, 0), (0, Vp - V)))

    return (
        jnp.asarray(w1).T.astype(matmul_dtype),                  # (H, H)
        jnp.asarray(b1).reshape(1, H).astype(jnp.float32),
        jnp.asarray(gamma).reshape(1, H).astype(jnp.float32),
        jnp.asarray(beta).reshape(1, H).astype(jnp.float32),
        wdec_t,                                                  # (H, Vp)
        bvoc,                                                    # (1, Vp)
        V,
    )


def _vmem_budget_bytes(tm, tn, H, matmul_bytes, out_bytes):
    """Estimate scoped VMEM use (double-buffered pipeline tiles + scratch)."""
    db = 2
    b = db * tm * H * matmul_bytes        # x token tile
    b += db * H * H * matmul_bytes        # transform weight (constant block)
    b += db * 3 * H * 4                   # b1 / gamma / beta
    b += db * H * tn * matmul_bytes       # decoder weight vocab tile
    b += db * tn * 4                      # vocab bias tile
    b += db * tm * tn * out_bytes         # output tile
    b += tm * H * matmul_bytes            # cached h scratch
    return b


# --------------------------------------------------------------------------
# Wrapper
# --------------------------------------------------------------------------
def mlm_head(x, params, *, tm=512, tn=1024, out_dtype=jnp.bfloat16,
             vmem_limit_bytes=None, constant_block_buffers=None,
             slice_output=True):
    """x: (B, S, H). params: output of prepare_mlm_params. Returns (B, S, V)
    (or the padded (B, S, Vp) slab if slice_output=False, for loss fusion)."""
    w1_t, b1, gamma, beta, wdec_p, bvoc_p, V = params
    B, S, H = x.shape
    Vp = wdec_p.shape[1]
    matmul_dtype = w1_t.dtype
    matmul_bytes = jnp.dtype(matmul_dtype).itemsize
    out_bytes = jnp.dtype(out_dtype).itemsize

    M = B * S
    # bf16 packs (16, 128) per vreg -> token tile a multiple of 16 sublanes.
    tm = min(tm, _round_up(M, 16))
    if M >= 32:
        # Cap tm so the parallel token axis has >= 2 tiles (v7x megacore).
        tm = min(tm, _round_up((M + 1) // 2, 16))
    tm = max(16, tm)
    Mp = _round_up(M, tm)

    # Vocab tile: multiple of 128 that divides the pre-padded Vp.
    tn = max(128, min(tn, Vp))
    tn = (tn // 128) * 128
    while Vp % tn != 0:
        tn -= 128

    x2 = x.reshape(M, H).astype(matmul_dtype)
    if Mp != M:
        x2 = jnp.pad(x2, ((0, Mp - M), (0, 0)))

    grid = (Mp // tm, Vp // tn)

    if vmem_limit_bytes is None:
        need = _vmem_budget_bytes(tm, tn, H, matmul_bytes, out_bytes)
        vmem_limit_bytes = min(max(int(need * 1.25) + (2 << 20), 8 << 20),
                               56 << 20)   # stay inside v7x's 64 MiB physical

    # Grid-constant operands (index_map never changes). Optionally single-
    # buffer them (pl.Buffered(1)) to free VMEM on v7x; default leaves the
    # compiler's choice to guarantee portability.
    const_kw = {}
    if constant_block_buffers is not None:
        const_kw = dict(pipeline_mode=pl.Buffered(constant_block_buffers))

    cost = pl.CostEstimate(
        flops=2 * Mp * H * H + 2 * Mp * H * Vp,
        transcendentals=Mp * H,                         # erf in GELU
        bytes_accessed=(Mp * H * matmul_bytes           # x read
                        + H * H * matmul_bytes          # W1 read
                        + grid[0] * H * Vp * matmul_bytes   # W_dec re-streamed
                        + Vp * 4                        # vocab bias
                        + Mp * Vp * out_bytes),         # logits writeback
    )

    out = pl.pallas_call(
        mlm_head_kernel,
        out_shape=jax.ShapeDtypeStruct((Mp, Vp), out_dtype),
        grid_spec=pltpu.PrefetchScalarGridSpec(
            num_scalar_prefetch=0,
            grid=grid,
            in_specs=[
                pl.BlockSpec((tm, H), lambda i, j: (i, 0)),             # x tile
                pl.BlockSpec((H, H), lambda i, j: (0, 0), **const_kw),  # W1
                pl.BlockSpec((1, H), lambda i, j: (0, 0), **const_kw),  # b1
                pl.BlockSpec((1, H), lambda i, j: (0, 0), **const_kw),  # gamma
                pl.BlockSpec((1, H), lambda i, j: (0, 0), **const_kw),  # beta
                pl.BlockSpec((H, tn), lambda i, j: (0, j)),             # W_dec
                pl.BlockSpec((1, tn), lambda i, j: (0, j)),             # v bias
            ],
            out_specs=pl.BlockSpec((tm, tn), lambda i, j: (i, j)),
            # cached post-LayerNorm activation, reused across all vocab tiles
            scratch_shapes=[pltpu.VMEM((tm, H), matmul_dtype)],
        ),
        compiler_params=pltpu.CompilerParams(
            dimension_semantics=("parallel", "arbitrary"),
            vmem_limit_bytes=vmem_limit_bytes),
        cost_estimate=cost,
    )(x2, w1_t, b1, gamma, beta, wdec_p, bvoc_p)

    if not slice_output:
        # TODO(synk): fuse softmax/cross-entropy so the (M, V) logits slab
        # never round-trips HBM; caller consumes the padded slab directly.
        return out.reshape(B, S // 1 if False else -1, Vp) if False else out
    if Mp != M or Vp != V:
        out = out[:M, :V]
    return out.reshape(B, S, V)


# --------------------------------------------------------------------------
# Pure-JAX reference (mirrors the PyTorch forward with the same precision
# policy as the kernel: bf16 matmul inputs, f32 accumulation, f32 elementwise)
# --------------------------------------------------------------------------
def _reference(x, w1, b1, gamma, beta, w_dec, b_vocab,
               matmul_dtype=jnp.bfloat16):
    xb = x.astype(matmul_dtype)
    w1b = w1.astype(matmul_dtype)
    h = jnp.einsum("bsh,oh->bso", xb, w1b,
                   preferred_element_type=jnp.float32) + b1
    h = 0.5 * h * (1.0 + jax.lax.erf(h * _INV_SQRT2))
    mean = jnp.mean(h, -1, keepdims=True)
    var = jnp.mean((h - mean) ** 2, -1, keepdims=True)
    h = (h - mean) * jax.lax.rsqrt(var + LN_EPS) * gamma + beta
    hb = h.astype(matmul_dtype)
    wdb = w_dec.astype(matmul_dtype)
    return jnp.einsum("bsh,vh->bsv", hb, wdb,
                      preferred_element_type=jnp.float32) + b_vocab


if __name__ == "__main__":
    # Small shapes: V intentionally non-multiple-of-128 to exercise the hoisted
    # vocab padding, tn=512 with Vp=1024 gives 2 vocab grid steps to exercise
    # the cached-h reuse path.
    B, S, H, V = 2, 8, 128, 1000

    key = jax.random.PRNGKey(0)
    kx, kw1, kb1, kg, kbt, kwd = jax.random.split(key, 6)

    x = jax.random.normal(kx, (B, S, H), dtype=jnp.float32)
    w1 = jax.random.normal(kw1, (H, H), dtype=jnp.float32) * 0.02
    b1 = jax.random.normal(kb1, (H,), dtype=jnp.float32) * 0.02
    gamma = 1.0 + 0.1 * jax.random.normal(kg, (H,), dtype=jnp.float32)
    beta = 0.1 * jax.random.normal(kbt, (H,), dtype=jnp.float32)
    w_dec = jax.random.normal(kwd, (V, H), dtype=jnp.float32) * 0.02
    b_vocab = jnp.zeros((V,), dtype=jnp.float32)   # nn.Parameter(torch.zeros(V))

    params = prepare_mlm_params(w1, b1, gamma, beta, w_dec, b_vocab,
                                vocab_pad_multiple=512)
    ref = _reference(x, w1, b1, gamma, beta, w_dec, b_vocab)

    # f32-output path: tight correctness check against the reference.
    out_f32 = mlm_head(x, params, tm=512, tn=512, out_dtype=jnp.float32)
    out_f32 = jax.block_until_ready(out_f32)
    assert out_f32.shape == (B, S, V)
    max_err = jnp.max(jnp.abs(out_f32 - ref))
    assert jnp.allclose(out_f32, ref, atol=2e-3, rtol=2e-3), f"max err {max_err}"

    # Default bf16-output path (halves the logits HBM writeback): loose check.
    out_bf16 = mlm_head(x, params, tm=512, tn=512)
    out_bf16 = jax.block_until_ready(out_bf16)
    assert out_bf16.dtype == jnp.bfloat16 and out_bf16.shape == (B, S, V)
    ref_bf16 = ref.astype(jnp.bfloat16).astype(jnp.float32)
    max_err_b = jnp.max(jnp.abs(out_bf16.astype(jnp.float32) - ref_bf16))
    assert jnp.allclose(out_bf16.astype(jnp.float32), ref_bf16,
                        atol=2e-2, rtol=2e-2), f"bf16 max err {max_err_b}"

    print("KERNEL_OK")
</pallas_src>

<mosaic_0001>
module attributes {stable_mosaic.version = 11 : i64} {
  func.func @mlm_head_kernel(%arg0: i32, %arg1: i32, %arg2: memref<16x128xbf16, #tpu.memory_space<vmem>>, %arg3: memref<128x128xbf16, #tpu.memory_space<vmem>>, %arg4: memref<1x128xf32, #tpu.memory_space<vmem>>, %arg5: memref<1x128xf32, #tpu.memory_space<vmem>>, %arg6: memref<1x128xf32, #tpu.memory_space<vmem>>, %arg7: memref<128x512xbf16, #tpu.memory_space<vmem>>, %arg8: memref<1x512xf32, #tpu.memory_space<vmem>>, %arg9: memref<16x512xf32, #tpu.memory_space<vmem>>, %arg10: memref<16x128xbf16, #tpu.memory_space<vmem>>) attributes {dimension_semantics = [#tpu.dimension_semantics<parallel>, #tpu.dimension_semantics<arbitrary>], iteration_bounds = array<i64: 1, 2>, scalar_prefetch = 0 : i64, scratch_operands = 1 : i64, tpu.core_type = #tpu.core_type<tc>, window_params = [{transform_indices = @transform_0, window_bounds = array<i64: 16, 128>}, {pipeline_mode = #tpu.pipeline_mode<synchronous>, transform_indices = @transform_1, window_bounds = array<i64: 128, 128>}, {pipeline_mode = #tpu.pipeline_mode<synchronous>, transform_indices = @transform_2, window_bounds = array<i64: 1, 128>}, {pipeline_mode = #tpu.pipeline_mode<synchronous>, transform_indices = @transform_3, window_bounds = array<i64: 1, 128>}, {pipeline_mode = #tpu.pipeline_mode<synchronous>, transform_indices = @transform_4, window_bounds = array<i64: 1, 128>}, {transform_indices = @transform_5, window_bounds = array<i64: 128, 512>}, {transform_indices = @transform_6, window_bounds = array<i64: 1, 512>}, {transform_indices = @transform_7, window_bounds = array<i64: 16, 512>}]} {
    %c0_i32 = arith.constant 0 : i32
    %0 = arith.cmpi eq, %arg1, %c0_i32 : i32
    %1 = arith.extui %0 : i1 to i32
    %c0_i32_0 = arith.constant 0 : i32
    %2 = arith.cmpi ne, %1, %c0_i32_0 : i32
    scf.if %2 {
      %c0_8 = arith.constant 0 : index
      %c0_9 = arith.constant 0 : index
      %10 = vector.load %arg2[%c0_8, %c0_9] : memref<16x128xbf16, #tpu.memory_space<vmem>>, vector<16x128xbf16>
      %c0_10 = arith.constant 0 : index
      %c0_11 = arith.constant 0 : index
      %11 = vector.load %arg3[%c0_10, %c0_11] : memref<128x128xbf16, #tpu.memory_space<vmem>>, vector<128x128xbf16>
      %cst_12 = arith.constant dense<0.000000e+00> : vector<16x128xf32>
      %12 = tpu.matmul %10, %11, %cst_12 {dimension_numbers = #tpu.dot_dimension_numbers<[1], [0], [0], [1], [0, 0, 1, 1], [], []>} : vector<16x128xbf16>, vector<128x128xbf16>, vector<16x128xf32> -> vector<16x128xf32>
      %c0_13 = arith.constant 0 : index
      %c0_14 = arith.constant 0 : index
      %13 = vector.load %arg4[%c0_13, %c0_14] : memref<1x128xf32, #tpu.memory_space<vmem>>, vector<1x128xf32>
      %14 = vector.broadcast %13 : vector<1x128xf32> to vector<16x128xf32>
      %15 = arith.addf %12, %14 : vector<16x128xf32>
      %cst_15 = arith.constant 5.000000e-01 : f32
      %16 = vector.broadcast %cst_15 : f32 to vector<16x128xf32>
      %17 = arith.mulf %16, %15 : vector<16x128xf32>
      %cst_16 = arith.constant 0.707106769 : f32
      %18 = vector.broadcast %cst_16 : f32 to vector<16x128xf32>
      %19 = arith.mulf %15, %18 : vector<16x128xf32>
      %20 = math.erf %19 : vector<16x128xf32>
      %cst_17 = arith.constant 1.000000e+00 : f32
      %21 = vector.broadcast %cst_17 : f32 to vector<16x128xf32>
      %22 = arith.addf %21, %20 : vector<16x128xf32>
      %23 = arith.mulf %17, %22 : vector<16x128xf32>
      %cst_18 = arith.constant dense<0.000000e+00> : vector<16xf32>
      %24 = vector.multi_reduction <add>, %23, %cst_18 [1] : vector<16x128xf32> to vector<16xf32>
      %25 = vector.shape_cast %24 : vector<16xf32> to vector<16x1xf32>
      %cst_19 = arith.constant 1.280000e+02 : f32
      %26 = vector.broadcast %cst_19 : f32 to vector<16x1xf32>
      %27 = arith.divf %25, %26 : vector<16x1xf32>
      %28 = vector.broadcast %27 : vector<16x1xf32> to vector<16x128xf32>
      %29 = arith.subf %23, %28 : vector<16x128xf32>
      %30 = arith.mulf %29, %29 : vector<16x128xf32>
      %cst_20 = arith.constant dense<0.000000e+00> : vector<16xf32>
      %31 = vector.multi_reduction <add>, %30, %cst_20 [1] : vector<16x128xf32> to vector<16xf32>
      %32 = vector.shape_cast %31 : vector<16xf32> to vector<16x1xf32>
      %cst_21 = arith.constant 1.280000e+02 : f32
      %33 = vector.broadcast %cst_21 : f32 to vector<16x1xf32>
      %34 = arith.divf %32, %33 : vector<16x1xf32>
      %cst_22 = arith.constant 9.99999996E-13 : f32
      %35 = vector.broadcast %cst_22 : f32 to vector<16x1xf32>
      %36 = arith.addf %34, %35 : vector<16x1xf32>
      %37 = math.rsqrt %36 : vector<16x1xf32>
      %38 = vector.broadcast %37 : vector<16x1xf32> to vector<16x128xf32>
      %39 = arith.mulf %29, %38 : vector<16x128xf32>
      %c0_23 = arith.constant 0 : index
      %c0_24 = arith.constant 0 : index
      %40 = vector.load %arg5[%c0_23, %c0_24] : memref<1x128xf32, #tpu.memory_space<vmem>>, vector<1x128xf32>
      %41 = vector.broadcast %40 : vector<1x128xf32> to vector<16x128xf32>
      %42 = arith.mulf %39, %41 : vector<16x128xf32>
      %c0_25 = arith.constant 0 : index
      %c0_26 = arith.constant 0 : index
      %43 = vector.load %arg6[%c0_25, %c0_26] : memref<1x128xf32, #tpu.memory_space<vmem>>, vector<1x128xf32>
      %44 = vector.broadcast %43 : vector<1x128xf32> to vector<16x128xf32>
      %45 = arith.addf %42, %44 : vector<16x128xf32>
      %46 = arith.truncf %45 : vector<16x128xf32> to vector<16x128xbf16>
      %c0_27 = arith.constant 0 : index
      %c0_28 = arith.constant 0 : index
      %47 = vector.load %arg10[%c0_27, %c0_28] : memref<16x128xbf16, #tpu.memory_space<vmem>>, vector<16x128xbf16>
      tpu.vector_store %arg10[%c0_27, %c0_28], %46 {strides = array<i32>} : memref<16x128xbf16, #tpu.memory_space<vmem>>, vector<16x128xbf16>,
    } else {
    }
    %c0 = arith.constant 0 : index
    %c0_1 = arith.constant 0 : index
    %3 = vector.load %arg10[%c0, %c0_1] : memref<16x128xbf16, #tpu.memory_space<vmem>>, vector<16x128xbf16>
    %c0_2 = arith.constant 0 : index
    %c0_3 = arith.constant 0 : index
    %4 = vector.load %arg7[%c0_2, %c0_3] : memref<128x512xbf16, #tpu.memory_space<vmem>>, vector<128x512xbf16>
    %cst = arith.constant dense<0.000000e+00> : vector<16x512xf32>
    %5 = tpu.matmul %3, %4, %cst {dimension_numbers = #tpu.dot_dimension_numbers<[1], [0], [0], [1], [0, 0, 1, 1], [], []>} : vector<16x128xbf16>, vector<128x512xbf16>, vector<16x512xf32> -> vector<16x512xf32>
    %c0_4 = arith.constant 0 : index
    %c0_5 = arith.constant 0 : index
    %6 = vector.load %arg8[%c0_4, %c0_5] : memref<1x512xf32, #tpu.memory_space<vmem>>, vector<1x512xf32>
    %7 = vector.broadcast %6 : vector<1x512xf32> to vector<16x512xf32>
    %8 = arith.addf %5, %7 : vector<16x512xf32>
    %c0_6 = arith.constant 0 : index
    %c0_7 = arith.constant 0 : index
    %9 = vector.load %arg9[%c0_6, %c0_7] : memref<16x512xf32, #tpu.memory_space<vmem>>, vector<16x512xf32>
    tpu.vector_store %arg9[%c0_6, %c0_7], %8 {strides = array<i32>} : memref<16x512xf32, #tpu.memory_space<vmem>>, vector<16x512xf32>,
    return
  }
  func.func @transform_0(%arg0: i32, %arg1: i32) -> (i32, i32) {
    %c0_i32 = arith.constant 0 : i32
    %c0_i32_0 = arith.constant 0 : i32
    return %arg0, %c0_i32 : i32, i32
  }
  func.func @transform_1(%arg0: i32, %arg1: i32) -> (i32, i32) {
    %c0_i32 = arith.constant 0 : i32
    %c0_i32_0 = arith.constant 0 : i32
    %c0_i32_1 = arith.constant 0 : i32
    return %c0_i32, %c0_i32_0 : i32, i32
  }
  func.func @transform_2(%arg0: i32, %arg1: i32) -> (i32, i32) {
    %c0_i32 = arith.constant 0 : i32
    %c0_i32_0 = arith.constant 0 : i32
    %c0_i32_1 = arith.constant 0 : i32
    return %c0_i32, %c0_i32_0 : i32, i32
  }
  func.func @transform_3(%arg0: i32, %arg1: i32) -> (i32, i32) {
    %c0_i32 = arith.constant 0 : i32
    %c0_i32_0 = arith.constant 0 : i32
    %c0_i32_1 = arith.constant 0 : i32
    return %c0_i32, %c0_i32_0 : i32, i32
  }
  func.func @transform_4(%arg0: i32, %arg1: i32) -> (i32, i32) {
    %c0_i32 = arith.constant 0 : i32
    %c0_i32_0 = arith.constant 0 : i32
    %c0_i32_1 = arith.constant 0 : i32
    return %c0_i32, %c0_i32_0 : i32, i32
  }
  func.func @transform_5(%arg0: i32, %arg1: i32) -> (i32, i32) {
    %c0_i32 = arith.constant 0 : i32
    %c0_i32_0 = arith.constant 0 : i32
    return %c0_i32, %arg1 : i32, i32
  }
  func.func @transform_6(%arg0: i32, %arg1: i32) -> (i32, i32) {
    %c0_i32 = arith.constant 0 : i32
    %c0_i32_0 = arith.constant 0 : i32
    return %c0_i32, %arg1 : i32, i32
  }
  func.func @transform_7(%arg0: i32, %arg1: i32) -> (i32, i32) {
    %c0_i32 = arith.constant 0 : i32
    return %arg0, %arg1 : i32, i32
  }
}

</mosaic_0001>

<bundles_post_ra>
// kernel: tpu_custom_call.1
= control target key start
LH: loop header
LB: loop body
LE: loop exit
PB: predicated region body
PF: predicated region fallthrough
CT: control target
= control target key end

     0   :  { %12 = vsyncpa [#allocation4], 0  ;;  %s1803_s0 = inlined_call_operand.hbm [shape: bf16[16,128], index: 0, kind: input, shape index: {}]   ;;  %s1804_s1 = inlined_call_operand.hbm [shape: bf16[128,128], index: 1, kind: input, shape index: {}]   ;;  %s1805_s2 = inlined_call_operand.vmem [shape: f32[1,128], index: 2, kind: input, shape index: {}]   ;;  %s1806_s3 = inlined_call_operand.vmem [shape: f32[1,128], index: 3, kind: input, shape index: {}]   ;;  %s1807_s4 = inlined_call_operand.vmem [shape: f32[1,128], index: 4, kind: input, shape index: {}]   ;;  %s1808_s5 = inlined_call_operand.hbm [shape: bf16[128,1024], index: 5, kind: input, shape index: {}]   ;;  %s1809_s6 = inlined_call_operand.vmem [shape: f32[1,1024], index: 6, kind: input, shape index: {}]   ;;  %s1810_s7 = inlined_call_operand.hbm [shape: f32[16,1024], index: 7, kind: output, shape index: {}]  }
   0x1   :  { %13 = vsyncpa [#allocation7], 0 }
   0x2   :  { %14 = vsyncpa [#allocation5], 0 }
   0x3   :  { %16 = vsyncpa [#allocation5 + $0x1], 0  ;;  %s1475_s24 = smov 0   ;;  %s1477_s25 = smov 0  }
   0x4   :  { %s1479_s26 = smov 0   ;;  %s1481_s27 = smov 0  }
   0x5   :  { %s1483_s28 = smov 0   ;;  %s1485_s29 = smov 0  }
   0x6 LB: > { %1818 = sst [smem:[#allocation14_spill]] %s1398_s24  ;;  %s1506_s30 = sadd.s32 4294967295, %s1418_s29   ;;  %s1418_s29 = sphi %s1485_s29, %s22_s29   ;;  %s1414_s28 = sphi %s1483_s28, %s1845_s28   ;;  %s1410_s27 = sphi %s1481_s27, %s1844_s27   ;;  %s1406_s26 = sphi %s1479_s26, %s1843_s26   ;;  %s1402_s25 = sphi %s1477_s25, %s1842_s25   ;;  %s1398_s24 = sphi %s1475_s24, %s1841_s24  }
   0x7   : > { %s988_s8 = sadd.s32 4294967294, %s1418_s29   ;;  %p158_p0 = scmp.ne.s32.totalorder %s1406_s26, %s1402_s25 }
   0x8   : > { %p159_p1 = scmp.eq.s32.totalorder %s1418_s29, 0  ;;  %p164_p2 = scmp.ne.s32.totalorder %s1402_s25, %s1398_s24 }
   0x9   : > { %p1811_p3 = scmp.eq.s32.totalorder %s1506_s30, 0  ;;  %p216_p4 = scmp.eq.s32.totalorder %s1506_s30, 1 }
   0xa   : > { %p1517_p5 = por %p159_p1, %p158_p0  ;;  %p222_p6 = scmp.eq.s32.totalorder %s988_s8, 1 }
   0xb   : > { %p1523_p7 = por %p1811_p3, %p164_p2  ;;  %p1527_p8 = por %p216_p4, %p158_p0 }
   0xc   : > { %p1531_p9 = por %p222_p6, %p164_p2  ;;  %p989_p10 = scmp.ge.s32.totalorder %s1418_s29, 1 }
   0xd   : > { %s1820_s11 = scalar_select %p1523_p7, 1, 0 }
   0xe   : > { %s1821_s12 = scalar_select %p1527_p8, 1, 0 }
   0xf   : > { %s1823_s13 = scalar_select %p1531_p9, 1, 0 }
  0x10   : > { %1822 = sst [smem:[#allocation15_spill]] %s1821_s12  ;;  %p229_p11 = scmp.lt.s32.totalorder %s1418_s29, 3 }
  0x11   : > { %1824 = sst [smem:[#allocation16_spill]] %s1823_s13  ;;  %s1420_s15 = smov [#allocation3]  }
  0x12   : > { %p1537_p12 = pnand %p989_p10, %p229_p11  ;;  %s244_s16 = sshll.u32 %s1420_s15, 4  ;;  %s1541_s16 = int_to_ptr.vmem [resolvable:$true] %s244_s16 }
  0x13   : > { %p1112_p1 = scmp.lt.s32.totalorder %s1418_s29, 2  ;;  %s1421_s18 = smov [#allocation6]  }
  0x14   : > { %p1095_p13 = pneg %p1537_p12  ;;  %s257_s19 = sshll.u32 %s1421_s18, 4  ;;  %s1559_s19 = int_to_ptr.vmem [resolvable:$true] %s257_s19 }
  0x15   : > { %p1555_p4 = pnand %p1112_p1, %p1517_p5  ;;  %s1242_s23 = scalar_lea.hbm %s1803_s0, 128 }
  0x16   : > { %p1549_p2 = pnand %p1095_p13, %p1811_p3  ;;  %p1243_p6 = scmp.ne.s32.totalorder %s1803_s0, %s1242_s23 }
  0x17   : > { %p1249_p5 = scmp.lt.u32.totalorder %s1242_s23, %s1803_s0 }
  0x18   : > { %p1244_p10 = pneg %p1549_p2 }
  0x1a   : > { %p1245_p11 = pnand %p1244_p10, %p1243_p6 }
  0x1c   : > { %p1246_p13 = pneg %p1245_p11 }
  0x1e   : > { %p1251_p1 = pnand %p1249_p5, %p1246_p13 }
  0x20   : > { %1254 = shalt.err (!%p1251_p1)
}
  0x21   : > { %s1255_s21 = scalar_lea.vmem %s1541_s16, 128  ;;  %p1263_p8 = scmp.lt.s32.totalorder %s1541_s16, %s1541_s16 }
  0x22   : > { %p1256_p0 = scmp.ne.s32.totalorder %s1541_s16, %s1255_s21  ;;  %p1264_p6 = scmp.lt.s32.totalorder %s1255_s21, %s1255_s21 }
  0x24   : > { %p1258_p3 = pnand %p1256_p0, %p1244_p10  ;;  %p1265_p11 = por %p1264_p6, %p1263_p8 }
  0x26   : > { %p1259_p9 = pneg %p1258_p3 }
  0x28   : > { %p1266_p7 = pnand %p1265_p11, %p1259_p9 }
  0x2a   : > { %1269 = shalt.err (!%p1266_p7)
}
  0x2b   : > { %s1422_s22 = smov 64   ;;  %s1423_s23 = smov 4  }
  0x2c   : > { %1098 = dma.hbm_to_vmem [thread:$0]  (!%p1549_p2), %s1803_s0, 128, %s1541_s16, [#allocation4], %s1422_s22, %s1422_s22, %s1423_s23  }
  0x2d   : > { %s1270_s9 = scalar_lea.hbm %s1804_s1, 1024 }
  0x2e   : > { %p1271_p3 = scmp.ne.s32.totalorder %s1804_s1, %s1270_s9  ;;  %p1277_p9 = scmp.lt.u32.totalorder %s1270_s9, %s1804_s1 }
  0x30   : > { %p1273_p7 = pnand %p1271_p3, %p1244_p10 }
  0x32   : > { %p1274_p8 = pneg %p1273_p7 }
  0x34   : > { %p1279_p0 = pnand %p1277_p9, %p1274_p8 }
  0x36   : > { %1282 = shalt.err (!%p1279_p0)
}
  0x37   : > { %s1283_s16 = scalar_lea.vmem %s1559_s19, 1024  ;;  %p1291_p6 = scmp.lt.s32.totalorder %s1559_s19, %s1559_s19 }
  0x38   : > { %p1284_p13 = scmp.ne.s32.totalorder %s1559_s19, %s1283_s16  ;;  %p1292_p11 = scmp.lt.s32.totalorder %s1283_s16, %s1283_s16 }
  0x3a   : > { %p1286_p5 = pnand %p1284_p13, %p1244_p10  ;;  %p1293_p3 = por %p1292_p11, %p1291_p6 }
  0x3c   : > { %p1287_p1 = pneg %p1286_p5 }
  0x3e   : > { %p1294_p7 = pnand %p1293_p3, %p1287_p1 }
  0x40   : > { %1297 = shalt.err (!%p1294_p7)
}
  0x41   : > { %1101 = dma.hbm_to_vmem [thread:$0]  (!%p1549_p2), %s1804_s1, 1024, %s1559_s19, [#allocation7], %s1422_s22, %s1422_s22, %s1423_s23  }
  0x42   : > { %s31_s12 = sadd.s32 1, %s1414_s28  ;;  %s280_s13 = sand.u32 1, %s1418_s29  }
  0x43   : > { %p32_p10 = scmp.ge.s32.totalorder %s31_s12, 2  ;;  %s282_s8 = sand.u32 1, %s1406_s26  }
  0x44   : > { %s1052_s15 = sshll.u32 %s1414_s28, 8  ;;  %s993_s17 = sshll.u32 %s282_s8, 8 }
  0x45   : > { %s1847_s12 = smov (%p32_p10, %s31_s12), 0  ;;  %s1622_s21 = scalar_lea.hbm %s1808_s5, %s1052_s15 }
  0x46   : > { %s148_s19 = ssub.s32 %s1414_s28, %s1847_s12  ;;  %s284_s22 = scalar_lea.vmem [#allocation8], %s993_s17 }
  0x47   : > { %p149_p2 = scmp.eq.s32.totalorder %s148_s19, 0  ;;  %s291_s23 = sshll.u32 %s284_s22, 4  ;;  %s1626_s23 = int_to_ptr.vmem [resolvable:$true] %s291_s23 }
  0x48   : > { %s1828_s16 = sadd.s32 1, %s1406_s26  ;;  %s1633_s9 = scalar_lea.sflag [#allocation4], %s280_s13 }
  0x49   : > { %s1631_s24 = scalar_select %p149_p2, %s1406_s26, %s1828_s16  }
  0x4a   : > { %s1298_s8 = scalar_lea.hbm %s1622_s21, 4096  ;;  %p1300_p9 = pneg %p1555_p4 }
  0x4b   : > { %p1299_p8 = scmp.ne.s32.totalorder %s1622_s21, %s1298_s8  ;;  %s1303_s17 = scalar_lea.hbm %s1808_s5, 8192 }
  0x4c   : > { %p1304_p5 = scmp.lt.u32.totalorder %s1622_s21, %s1808_s5  ;;  %p1305_p1 = scmp.lt.u32.totalorder %s1303_s17, %s1298_s8 }
  0x4d   : > { %p1301_p0 = pnand %p1300_p9, %p1299_p8  ;;  %p1307_p11 = scmp.lt.u32.totalorder %s1298_s8, %s1622_s21 }
  0x4e   : > { %p1306_p6 = por %p1305_p1, %p1304_p5 }
  0x4f   : > { %p1302_p13 = pneg %p1301_p0 }
  0x50   : > { %p1308_p3 = por %p1307_p11, %p1306_p6 }
  0x52   : > { %p1309_p7 = pnand %p1308_p3, %p1302_p13 }
  0x54   : > { %1312 = shalt.err (!%p1309_p7)
}
  0x55   : > { %s1313_s13 = scalar_lea.vmem %s1626_s23, 4096  ;;  %s1424_s22 = smov [#allocation8]  }
  0x56   : > { %p1314_p10 = scmp.ne.s32.totalorder %s1626_s23, %s1313_s13  ;;  %s1318_s16 = sshll.u32 %s1424_s22, 4  ;;  %s1319_s16 = int_to_ptr.vmem [resolvable:$false] %s1318_s16 }
  0x57   : > { %s1320_s15 = scalar_lea.vmem %s1319_s16, 8192  ;;  %p1321_p0 = scmp.lt.s32.totalorder %s1626_s23, %s1319_s16 }
  0x58   : > { %p1316_p2 = pnand %p1314_p10, %p1300_p9  ;;  %p1322_p5 = scmp.lt.s32.totalorder %s1320_s15, %s1313_s13 }
  0x5a   : > { %p1317_p8 = pneg %p1316_p2  ;;  %p1323_p1 = por %p1322_p5, %p1321_p0 }
  0x5c   : > { %p1324_p6 = pnand %p1323_p1, %p1317_p8 }
  0x5e   : > { %1327 = shalt.err (!%p1324_p6)
}
  0x5f   : > { %s1425_s8 = smov 512   ;;  %s1426_s10 = smov 256  }
  0x60   : > { %s1427_s17 = smov 16   ;;  %311 = sbr.rel (%p1537_p12) target bundleno = 964 (0x3c4), region = 48 }
  0x61   : > { %1105 = dma.hbm_to_vmem [thread:$0]  (!%p1555_p4), %s1622_s21, 4096, %s1626_s23, %s1633_s9, %s1425_s8, %s1426_s10, %s1427_s17  }
  0x62   : > { %p1829_p9 = scmp.eq.s32.totalorder (!%p1537_p12), %s1506_s30, 0 }
  0x67   : > { %1381 = dma.done.wait (%p1829_p9), [#allocation4], 128   ;;  %p1830_p13 = pmov %p1829_p9 }
  0x68   : > { %p1831_p11 = pmov %p1829_p9 }
  0x69   : > { %1383 = vsyncadd (%p1830_p13), [#allocation4], 4294967168 }
  0x6a   : > { %1385 = dma.done.wait (%p1831_p11), [#allocation7], 1024   ;;  %p1832_p3 = pmov %p1829_p9 }
  0x6b   : > { %s321_s20 = sand.u32 1, %s1506_s30   ;;  %s1673_s21 = sand.u32 1, %s1402_s25  }
  0x6c   : > { %1387 = vsyncadd (%p1832_p3), [#allocation7], 4294966272  ;;  %s999_s14 = sshll.u32 %s1673_s21, 8  ;;  %s322_s23 = scalar_lea.sflag [#allocation4], %s321_s20 }
  0x6d   : > { %s1676_s9 = scalar_lea.vmem [#allocation8], %s999_s14  ;;  %p1833_p12 = scmp.ne.s32.totalorder %s1820_s11, 0 }
  0x6f   : > { %1389 = dma.done.wait (%p1833_p12), %s322_s23, 4096  }
  0x70   : > { %1391 = vsyncadd (%p1833_p12), %s322_s23, 4294963200  ;;  %s1000_s18 = sshll.u32 %s1673_s21, 6  ;;  %s1001_s19 = sshll.u32 %s1410_s27, 2 }
  0x71   : > { %p363_p4 = scmp.lt.s32.totalorder %s1001_s19, 7  ;;  %s1690_s16 = scalar_lea.vmem [#allocation9], %s1000_s18 }
  0x72   : > { %p1002_p7 = scmp.ne.s32.totalorder %s1410_s27, 0 }
  0x73   : > { %s1849_s19 = smov (!%p363_p4, %s1001_s19), 7  ;;  %v1177_v0 = vld [vmem:[#allocation6] sm:$0xff] (!%p1002_p7)   ;;  %v1428_v1 = vmov (!%p1002_p7), 0.0   ;;  %v1178_v2 = vld [vmem:[#allocation6 + $0x8] sm:$0xff] (!%p1002_p7)   ;;  %vm1429_vm0 = vmmov (!%p1002_p7), 0   ;;  %v1179_v3 = vld [vmem:[#allocation6 + $0x10] sm:$0xff] (!%p1002_p7)  }
  0x74   : > { %s365_s22 = scalar_lea.vmem %s1809_s6, %s1849_s19  ;;  %373 = sbr.rel (%p1002_p7) target bundleno = 697 (0x2b9), region = 64  ;;  %1063 = vmatprep.subr.bf16.mxu0 (!%p1002_p7), %v1428_v1  ;;  %1079 = vmatprep.mubr.msk.bf16.mxu0 (!%p1002_p7), %vm1429_vm0, %v1428_v1  ;;  %v1180_v4 = vld [vmem:[#allocation6 + $0x18] sm:$0xff] (!%p1002_p7)   ;;  %v1181_v5 = vld [vmem:[#allocation6 + $0x20] sm:$0xff] (!%p1002_p7)   ;;  %v1182_v6 = vld [vmem:[#allocation6 + $0x28] sm:$0xff] (!%p1002_p7)  }
  0x75   : > { %1064 = vmatpush3.bf16.msra.mxu0 (!%p1002_p7), %v1177_v0  ;;  %v1183_v7 = vld [vmem:[#allocation6 + $0x30] sm:$0xff] (!%p1002_p7)   ;;  %v1184_v8 = vld [vmem:[#allocation6 + $0x38] sm:$0xff] (!%p1002_p7)  }
  0x76   : > { %1065 = vmatprep.subr.bf16.mxu0 (!%p1002_p7), %v1428_v1  ;;  %v1185_v9 = vld [vmem:[#allocation3] sm:$0xff] (!%p1002_p7)   ;;  %v1003_v10 = vld [vmem:[%s1805_s2] ss:$0 sm:$0xff] (!%p1002_p7) }
  0x77   : > { %v1013_v43 = vld [vmem:[%s1806_s3] ss:$0 sm:$0xff] (!%p1002_p7) }
  0x78   : > { %v1014_v47 = vld [vmem:[%s1807_s4] ss:$0 sm:$0xff] (!%p1002_p7) }
  0x79   : > { %1066 = vmatpush3.bf16.msra.mxu0 (!%p1002_p7), %v1178_v2 }
  0x7a   : > { %1067 = vmatprep.subr.bf16.mxu0 (!%p1002_p7), %v1428_v1 }
  0x7d   : > { %1068 = vmatpush3.bf16.msra.mxu0 %v1179_v3 }
  0x7e   : > { %1069 = vmatprep.subr.bf16.mxu0 %v1428_v1 }
  0x81   : > { %1070 = vmatpush3.bf16.msra.mxu0 %v1180_v4 }
  0x82   : > { %1071 = vmatprep.subr.bf16.mxu0 %v1428_v1 }
  0x85   : > { %1072 = vmatpush3.bf16.msra.mxu0 %v1181_v5 }
  0x86   : > { %1073 = vmatprep.subr.bf16.mxu0 %v1428_v1 }
  0x89   : > { %1074 = vmatpush3.bf16.msra.mxu0 %v1182_v6 }
  0x8a   : > { %1075 = vmatprep.subr.bf16.mxu0 %v1428_v1 }
  0x8d   : > { %1076 = vmatpush3.bf16.msra.mxu0 %v1183_v7 }
  0x8e   : > { %1077 = vmatprep.subr.bf16.mxu0 %v1428_v1 }
  0x91   : > { %1078 = vmatpush3.bf16.msra.mxu0 %v1184_v8 }
  0x94   : > { %1080 = vmatmul.mubr.bf16.vlgmr.msra.gmra.mrb[0].mxu0 %v1185_v9 }
 0x167   : > { %v487_v11 = vpop.f32.mrb[0].mxu0 }
 0x168   : > { %v488_v12 = vadd.f32 %v1003_v10, %v487_v11  ;;  %v1081_v13 = vpop.f32.mrb[1].mxu0 }
 0x169   : > { %v490_v14 = vpop.f32.mrb[2].mxu0 }
 0x16a   : > { %v496_v15 = vmul.f32 0.70710677, %v488_v12  ;;  %v491_v16 = vadd.f32 %v1003_v10, %v490_v14  ;;  %v1082_v17 = vpop.f32.mrb[3].mxu0  ;;  %v494_v20 = vmul.f32 0.5, %v488_v12 }
 0x16c   : > { %1186 = verf.f32 %v496_v15  ;;  %v497_v18 = vmul.f32 0.70710677, %v491_v16  ;;  %v495_v25 = vmul.f32 0.5, %v491_v16 }
 0x16e   : > { %1188 = verf.f32 %v497_v18 }
 0x176   : > { %v1187_v19 = vpop.eup %1186 }
 0x177   : > { %v500_v21 = vadd.f32 1.0, %v1187_v19 }
 0x178   : > { %v1189_v22 = vpop.eup %1188 }
 0x179   : > { %v502_v23 = vmul.f32 %v500_v21, %v494_v20  ;;  %v501_v24 = vadd.f32 1.0, %v1189_v22 }
 0x17b   : > { %504 = vadd.xlane.f32.xlu0 %v502_v23  ;;  %v503_v26 = vmul.f32 %v501_v24, %v495_v25 }
 0x17f   : > { %506 = vadd.xlane.f32.xlu0 %v503_v26 }
 0x208   : > { %v505_v27 = vpop.xlane.xlu0 %504 }
 0x209   : > { %v509_v28 = vmul.f32 0.0078125, %v505_v27 }
 0x20b   : > { %v511_v29 = vsub.f32 %v502_v23, %v509_v28 }
 0x20c   : > { %v507_v30 = vpop.xlane.xlu0 %506 }
 0x20d   : > { %v510_v31 = vmul.f32 0.0078125, %v507_v30  ;;  %v513_v32 = vmul.f32 %v511_v29, %v511_v29 }
 0x20f   : > { %v512_v33 = vsub.f32 %v503_v26, %v510_v31  ;;  %515 = vadd.xlane.f32.xlu1 %v513_v32 }
 0x211   : > { %v514_v34 = vmul.f32 %v512_v33, %v512_v33 }
 0x213   : > { %517 = vadd.xlane.f32.xlu1 %v514_v34 }
 0x29c   : > { %v516_v35 = vpop.xlane.xlu1 %515 }
 0x29d   : > { %v519_v36 = vmul.f32 0.0078125, %v516_v35 }
 0x29f   : > { %v521_v37 = vadd.f32 1e-12, %v519_v36 }
 0x2a0   : > { %v518_v38 = vpop.xlane.xlu1 %517 }
 0x2a1   : > { %1190 = vrsqrt.f32 %v521_v37  ;;  %v520_v39 = vmul.f32 0.0078125, %v518_v38 }
 0x2a3   : > { %v522_v40 = vadd.f32 1e-12, %v520_v39 }
 0x2a5   : > { %1192 = vrsqrt.f32 %v522_v40 }
 0x2ab   : > { %v1191_v41 = vpop.eup %1190 }
 0x2ac   : > { %v525_v42 = vmul.f32 %v1191_v41, %v511_v29 }
 0x2ae   : > { %v534_v45 = vmul.f32 %v1013_v43, %v525_v42 }
 0x2af   : > { %v1193_v44 = vpop.eup %1192 }
 0x2b0   : > { %v526_v46 = vmul.f32 %v1193_v44, %v512_v33  ;;  %v543_v49 = vadd.f32 %v1014_v47, %v534_v45 }
 0x2b2   : > { %v535_v48 = vmul.f32 %v1013_v43, %v526_v46 }
 0x2b4   : > { %v544_v50 = vadd.f32 %v1014_v47, %v535_v48 }
 0x2b6   : > { %v545_v51 = vpack.c.bf16 %v544_v50, %v543_v49 }
 0x2b8   : > { %546 = vst [vmem:[#allocation2] sm:$0xff] %v545_v51 }
 0x2b9 PF: > { %v1194_v52 = vld [vmem:[%s1676_s9 + $0x4] ss:$16 sps:$4 sm:$0xff]   ;;  %v1196_v53 = vld [vmem:[%s1676_s9 + $0xc] ss:$16 sps:$4 sm:$0xff]   ;;  %v1430_v54 = vmov 0   ;;  %v582_v22 = vlaneseq  ;;  %s873_s18 = sshll.u32 %s1690_s16, 4  ;;  %s1748_s18 = int_to_ptr.vmem [resolvable:$true] %s873_s18 }
 0x2ba   : > { %794 = vmatprep.mubr.bf16.mxu0 %v1430_v54  ;;  %837 = vmatprep.mubr.bf16.mxu1 %v1430_v54  ;;  %v1198_v55 = vld [vmem:[%s1676_s9] ss:$16 sps:$4 sm:$0xff]   ;;  %v1199_v56 = vld [vmem:[%s1676_s9 + $0x8] ss:$16 sps:$4 sm:$0xff]   ;;  %v1200_v57 = vld [vmem:[%s1676_s9 + $0x24] ss:$16 sps:$4 sm:$0xff]  }
 0x2bb   : > { %762 = vmatprep.subr.bf16.mxu0 %v1194_v52  ;;  %805 = vmatprep.subr.bf16.mxu1 %v1196_v53  ;;  %v1202_v58 = vld [vmem:[%s1676_s9 + $0x2c] ss:$16 sps:$4 sm:$0xff]   ;;  %v1204_v59 = vld [vmem:[%s1676_s9 + $0x20] ss:$16 sps:$4 sm:$0xff]   ;;  %v1205_v60 = vld [vmem:[%s1676_s9 + $0x28] ss:$16 sps:$4 sm:$0xff]  }
 0x2bc   : > { %763 = vmatpush1.bf16.msra.mxu0 %v1198_v55  ;;  %806 = vmatpush1.bf16.msra.mxu1 %v1199_v56  ;;  %v1206_v61 = vld [vmem:[%s1676_s9 + $0x44] ss:$16 sps:$4 sm:$0xff]   ;;  %v1208_v62 = vld [vmem:[%s1676_s9 + $0x4c] ss:$16 sps:$4 sm:$0xff]   ;;  %v1210_v63 = vld [vmem:[%s1676_s9 + $0x40] ss:$16 sps:$4 sm:$0xff]  }
 0x2bd   : > { %764 = vmatprep.subr.bf16.mxu0 %v1200_v57  ;;  %807 = vmatprep.subr.bf16.mxu1 %v1202_v58  ;;  %v1211_v0 = vld [vmem:[%s1676_s9 + $0x48] ss:$16 sps:$4 sm:$0xff]   ;;  %v1212_v1 = vld [vmem:[%s1676_s9 + $0x64] ss:$16 sps:$4 sm:$0xff]   ;;  %v1214_v2 = vld [vmem:[%s1676_s9 + $0x6c] ss:$16 sps:$4 sm:$0xff]  }
 0x2be   : > { %v1216_v3 = vld [vmem:[%s1676_s9 + $0x60] ss:$16 sps:$4 sm:$0xff]   ;;  %v1217_v4 = vld [vmem:[%s1676_s9 + $0x68] ss:$16 sps:$4 sm:$0xff]   ;;  %v1218_v5 = vld [vmem:[%s1676_s9 + $0x84] ss:$16 sps:$4 sm:$0xff]  }
 0x2bf   : > { %v1220_v6 = vld [vmem:[%s1676_s9 + $0x8c] ss:$16 sps:$4 sm:$0xff]   ;;  %v1222_v7 = vld [vmem:[%s1676_s9 + $0x80] ss:$16 sps:$4 sm:$0xff]   ;;  %v1223_v8 = vld [vmem:[%s1676_s9 + $0x88] ss:$16 sps:$4 sm:$0xff]  }
 0x2c0   : > { %765 = vmatpush1.bf16.msra.mxu0 %v1204_v59  ;;  %808 = vmatpush1.bf16.msra.mxu1 %v1205_v60  ;;  %v1224_v9 = vld [vmem:[%s1676_s9 + $0xa4] ss:$16 sps:$4 sm:$0xff]   ;;  %v1226_v10 = vld [vmem:[%s1676_s9 + $0xac] ss:$16 sps:$4 sm:$0xff]   ;;  %v1228_v11 = vld [vmem:[%s1676_s9 + $0xa0] ss:$16 sps:$4 sm:$0xff]  }
 0x2c1   : > { %766 = vmatprep.subr.bf16.mxu0 %v1206_v61  ;;  %809 = vmatprep.subr.bf16.mxu1 %v1208_v62  ;;  %v1229_v12 = vld [vmem:[%s1676_s9 + $0xa8] ss:$16 sps:$4 sm:$0xff]   ;;  %v1230_v13 = vld [vmem:[%s1676_s9 + $0xc4] ss:$16 sps:$4 sm:$0xff]   ;;  %v1232_v14 = vld [vmem:[%s1676_s9 + $0xcc] ss:$16 sps:$4 sm:$0xff]  }
 0x2c2   : > { %v1234_v15 = vld [vmem:[%s1676_s9 + $0xc0] ss:$16 sps:$4 sm:$0xff]   ;;  %v1235_v16 = vld [vmem:[%s1676_s9 + $0xc8] ss:$16 sps:$4 sm:$0xff]   ;;  %v1236_v17 = vld [vmem:[%s1676_s9 + $0xe4] ss:$16 sps:$4 sm:$0xff]  }
 0x2c3   : > { %v1238_v18 = vld [vmem:[%s1676_s9 + $0xec] ss:$16 sps:$4 sm:$0xff]   ;;  %v1240_v19 = vld [vmem:[%s1676_s9 + $0xe0] ss:$16 sps:$4 sm:$0xff]   ;;  %v1241_v20 = vld [vmem:[%s1676_s9 + $0xe8] ss:$16 sps:$4 sm:$0xff]  }
 0x2c4   : > { %767 = vmatpush1.bf16.msra.mxu0 %v1210_v63  ;;  %810 = vmatpush1.bf16.msra.mxu1 %v1211_v0  ;;  %v547_v21 = vld [vmem:[#allocation2] sm:$0xff]  ;;  %v583_v23 = vshrl.u32 %v582_v22, 7  ;;  %s1053_s9 = sshll.u32 %s1410_s27, 9  ;;  %s1834_s13 = sld [smem:[#allocation15_spill]] }
 0x2c5   : > { %768 = vmatprep.subr.bf16.mxu0 %v1212_v1  ;;  %811 = vmatprep.subr.bf16.mxu1 %v1214_v2  ;;  %v580_v26 = vld [vmem:[%s365_s22] sm:$0xf]  ;;  %s1744_s27 = scalar_lea.hbm %s1810_s7, %s1053_s9  ;;  %s857_s22 = scalar_lea.sflag [#allocation5], %s1673_s21 }
 0x2c6   : > { %v584_v24 = vsub.s32 0, %v583_v23  ;;  %v592_v25 = vsub.s32 2, %v583_v23  ;;  %v588_v27 = vsub.s32 1, %v583_v23  ;;  %v596_v28 = vsub.s32 3, %v583_v23  ;;  %s1328_s11 = scalar_lea.vmem %s1748_s18, 1024  ;;  %s1431_s15 = smov [#allocation9]  }
 0x2c7   : > { %p1329_p10 = scmp.ne.s32.totalorder %s1748_s18, %s1328_s11  ;;  %s1332_s8 = sshll.u32 %s1431_s15, 4  ;;  %s1333_s8 = int_to_ptr.vmem [resolvable:$false] %s1332_s8 }
 0x2c8   : > { %769 = vmatpush1.bf16.msra.mxu0 %v1216_v3  ;;  %812 = vmatpush1.bf16.msra.mxu1 %v1217_v4  ;;  %v585_v29 = vrot.slane %v580_v26, %v584_v24  ;;  %v593_v30 = vrot.slane %v580_v26, %v592_v25  ;;  %v589_v31 = vrot.slane %v580_v26, %v588_v27  ;;  %s1334_s10 = scalar_lea.vmem %s1333_s8, 2048  ;;  %p1335_p5 = scmp.lt.s32.totalorder %s1748_s18, %s1333_s8 }
 0x2c9   : > { %770 = vmatprep.subr.bf16.mxu0 %v1218_v5  ;;  %813 = vmatprep.subr.bf16.mxu1 %v1220_v6  ;;  %v597_v32 = vrot.slane %v580_v26, %v596_v28  ;;  %p1336_p1 = scmp.lt.s32.totalorder %s1334_s10, %s1328_s11 }
 0x2ca   : > { %p1835_p2 = scmp.ne.s32.totalorder %s1834_s13, 0 }
 0x2cb   : > { %p1337_p6 = por %p1336_p1, %p1335_p5 }
 0x2cc   : > { %771 = vmatpush1.bf16.msra.mxu0 %v1222_v7  ;;  %814 = vmatpush1.bf16.msra.mxu1 %v1223_v8  ;;  %p1330_p8 = pnand %p1329_p10, %p1835_p2 }
 0x2cd   : > { %772 = vmatprep.subr.bf16.mxu0 %v1224_v9  ;;  %815 = vmatprep.subr.bf16.mxu1 %v1226_v10 }
 0x2ce   : > { %p1331_p0 = pneg %p1330_p8 }
 0x2d0   : > { %773 = vmatpush1.bf16.msra.mxu0 %v1228_v11  ;;  %816 = vmatpush1.bf16.msra.mxu1 %v1229_v12  ;;  %p1338_p9 = pnand %p1337_p6, %p1331_p0 }
 0x2d1   : > { %774 = vmatprep.subr.bf16.mxu0 %v1230_v13  ;;  %817 = vmatprep.subr.bf16.mxu1 %v1232_v14 }
 0x2d4   : > { %775 = vmatpush1.bf16.msra.mxu0 %v1234_v15  ;;  %818 = vmatpush1.bf16.msra.mxu1 %v1235_v16 }
 0x2d5   : > { %776 = vmatprep.subr.bf16.mxu0 %v1236_v17  ;;  %819 = vmatprep.subr.bf16.mxu1 %v1238_v18 }
 0x2d8   : > { %777 = vmatpush1.bf16.msra.mxu0 %v1240_v19  ;;  %820 = vmatpush1.bf16.msra.mxu1 %v1241_v20 }
 0x2db   : > { %795 = vmatmul.mubr.bf16.vlgmr.msra.gmra.mrb[0].mxu0 %v547_v21  ;;  %838 = vmatmul.mubr.bf16.vlgmr.msra.gmra.mrb[0].mxu1 %v547_v21 }
 0x3ae   : > { %v796_v33 = vpop.f32.mrb[0].mxu0  ;;  %v839_v34 = vpop.f32.mrb[0].mxu1 }
 0x3af   : > { %v797_v35 = vadd.f32 %v796_v33, %v585_v29  ;;  %v840_v36 = vadd.f32 %v839_v34, %v593_v30  ;;  %v798_v37 = vpop.f32.mrb[1].mxu0  ;;  %v841_v38 = vpop.f32.mrb[1].mxu1 }
 0x3b0   : > { %v799_v39 = vadd.f32 %v798_v37, %v589_v31  ;;  %v842_v40 = vadd.f32 %v841_v38, %v597_v32  ;;  %v800_v41 = vpop.f32.mrb[2].mxu0  ;;  %v843_v42 = vpop.f32.mrb[2].mxu1 }
 0x3b1   : > { %848 = vst [vmem:[%s1690_s16] sm:$0xff] %v797_v35  ;;  %850 = vst [vmem:[%s1690_s16 + $0x10] sm:$0xff] %v840_v36  ;;  %v801_v43 = vadd.f32 %v800_v41, %v585_v29  ;;  %v844_v44 = vadd.f32 %v843_v42, %v593_v30  ;;  %v802_v45 = vpop.f32.mrb[3].mxu0  ;;  %v845_v46 = vpop.f32.mrb[3].mxu1 }
 0x3b2   : > { %849 = vst [vmem:[%s1690_s16 + $0x8] sm:$0xff] %v799_v39  ;;  %851 = vst [vmem:[%s1690_s16 + $0x18] sm:$0xff] %v842_v40  ;;  %v803_v47 = vadd.f32 %v802_v45, %v589_v31  ;;  %v846_v48 = vadd.f32 %v845_v46, %v597_v32 }
 0x3b3   : > { %852 = vst [vmem:[%s1690_s16 + $0x20] sm:$0xff] %v801_v43  ;;  %854 = vst [vmem:[%s1690_s16 + $0x30] sm:$0xff] %v844_v44 }
 0x3b4   : > { %853 = vst [vmem:[%s1690_s16 + $0x28] sm:$0xff] %v803_v47  ;;  %855 = vst [vmem:[%s1690_s16 + $0x38] sm:$0xff] %v846_v48 }
 0x3b5   : > { %1341 = shalt.err (!%p1338_p9)
}
 0x3b6   : > { %s1342_s16 = scalar_lea.hbm %s1744_s27, 1024  ;;  %s1346_s14 = scalar_lea.hbm %s1810_s7, 2048 }
 0x3b7   : > { %p1343_p13 = scmp.ne.s32.totalorder %s1744_s27, %s1342_s16  ;;  %p1347_p12 = scmp.lt.u32.totalorder %s1744_s27, %s1810_s7 }
 0x3b8   : > { %p1348_p4 = scmp.lt.u32.totalorder %s1346_s14, %s1342_s16  ;;  %p1350_p10 = scmp.lt.u32.totalorder %s1342_s16, %s1744_s27 }
 0x3b9   : > { %p1344_p11 = pnand %p1343_p13, %p1835_p2 }
 0x3ba   : > { %p1349_p7 = por %p1348_p4, %p1347_p12 }
 0x3bb   : > { %p1345_p3 = pneg %p1344_p11 }
 0x3bc   : > { %p1351_p8 = por %p1350_p10, %p1349_p7 }
 0x3be   : > { %p1352_p0 = pnand %p1351_p8, %p1345_p3 }
 0x3c0   : > { %1355 = shalt.err (!%p1352_p0)
}
 0x3c1   : > { %s1432_s19 = smov 512   ;;  %s1433_s30 = smov 1024  }
 0x3c2   : > { %s1434_s11 = smov 32  }
 0x3c3   : > { %1093 = dma.vmem_to_hbm [thread:$0]  (%p1835_p2), %s1748_s18, 1024, %s1744_s27, %s857_s22, %s1432_s19, %s1433_s30, %s1434_s11  }
 0x3c4 PF: > { %s1836_s15 = sld [smem:[#allocation14_spill]]  ;;  %s1837_s8 = sld [smem:[#allocation16_spill]] }
 0x3c5   : > { %p1839_p1 = scmp.ge.s32.totalorder %s1418_s29, 2 }
 0x3ca   : > { %s888_s10 = sand.u32 1, %s1836_s15   ;;  %p1838_p5 = scmp.ne.s32.totalorder %s1837_s8, 0 }
 0x3cb   : > { %s889_s16 = scalar_lea.sflag [#allocation5], %s888_s10 }
 0x3cc   : > { %p1107_p6 = pnand %p1839_p1, %p1838_p5 }
 0x3ce   : > { %1393 = dma.done.wait (!%p1107_p6), %s889_s16, 1024  }
 0x3cf   : > { %1395 = vsyncadd (!%p1107_p6), %s889_s16, 4294966272  ;;  %s22_s29 = sadd.s32 1, %s1418_s29   ;;  %s1840_s17 = smov %s1631_s24 }
 0x3d0   : > { %p19_p9 = scmp.ge.s32.totalorder %s22_s29, 4   ;;  %s1841_s24 = smov %s1402_s25 }
 0x3d1   : > { %s1842_s25 = smov %s1406_s26  ;;  %s1843_s26 = smov %s1840_s17 }
 0x3d2   : > { %s1844_s27 = smov %s1414_s28  ;;  %s1845_s28 = smov %s1847_s12 }
 0x3d3   :  { %21 = sbr.rel (!%p19_p9) target bundleno = 6 (0x6), region = 108 }
 0x3da   :  { %894 = vsyncpa [#allocation4], 1 }
 0x3db   :  { %896 = vsyncpa [#allocation4 + $0x1], 1 }
 0x3dc   :  { %897 = vsyncpa [#allocation7], 1 }
 0x3dd   :  { %898 = vsyncpa [#allocation5], 1 }
 0x3de   :  { %900 = vsyncpa [#allocation5 + $0x1], 1 }

</bundles_post_ra>
